<compile_context>
chip_gen: v7x
topology: tpu7x:2x2x1
jax: 0.10.0
libtpu: 0.0.40
codegen_flags: <defaults>
</compile_context>

<pallas_src>
import functools

import jax
import jax.numpy as jnp
from jax import lax
from jax.experimental import pallas as pl
from jax.experimental.pallas import tpu as pltpu


def _round_up(x: int, m: int) -> int:
    return ((x + m - 1) // m) * m


# ----------------------------------------------------------------------------
# Path 1: VMEM-resident table, one-hot MXU gather (V-tiled).
# ----------------------------------------------------------------------------
def _gather_mxu_kernel(ids_ref, table_ref, out_ref, *, vocab, v_tile):
    ids = ids_ref[...]                       # (T, 1) int32, clamped to [0, V-1]
    T, E = out_ref.shape

    def tile_dot(start, size, acc):
        # one-hot for rows [start, start+size) of the vocabulary
        local = start + lax.broadcasted_iota(jnp.int32, (T, size), 1)
        onehot = (ids == local).astype(table_ref.dtype)
        return acc + jnp.dot(
            onehot,
            table_ref[pl.ds(start, size), :],
            preferred_element_type=jnp.float32,
        )

    n_full = vocab // v_tile
    rem = vocab - n_full * v_tile

    acc = jnp.zeros((T, E), jnp.float32)
    if n_full > 0:
        def body(v, acc):
            start = pl.multiple_of(v * v_tile, v_tile)
            return tile_dot(start, v_tile, acc)
        acc = lax.fori_loop(0, n_full, body, acc)
    if rem > 0:
        acc = tile_dot(n_full * v_tile, rem, acc)

    out_ref[...] = acc.astype(out_ref.dtype)


# ----------------------------------------------------------------------------
# Path 2: table in HBM, per-row DMAs straight into the output block.
# ----------------------------------------------------------------------------
def _gather_hbm_kernel(ids_ref, emb_hbm_ref, out_ref, sems, *, chunk, inflight):
    mask = inflight - 1                      # inflight is a power of two

    def issue(t, row):
        pltpu.make_async_copy(
            emb_hbm_ref.at[pl.ds(row, 1), :],
            out_ref.at[pl.ds(t, 1), :],
            sems.at[t & mask],
        ).start()

    def wait(t):
        # Dummy src (row 0) with the SAME (1, E) shape as the issue: only the
        # byte count and the semaphore slot matter for the wait.  Do not let
        # issue/wait shapes diverge.
        pltpu.make_async_copy(
            emb_hbm_ref.at[pl.ds(0, 1), :],
            out_ref.at[pl.ds(t, 1), :],
            sems.at[t & mask],
        ).wait()

    k = min(inflight, chunk)

    def prime(t, c):                         # fill the ring
        issue(t, ids_ref[t])
        return c
    lax.fori_loop(0, k, prime, 0, unroll=True)

    def steady(t, c):                        # retire one, issue one
        row = ids_ref[t]                     # hoist SMEM read above the wait
        wait(t - k)
        issue(t, row)
        return c
    lax.fori_loop(k, chunk, steady, 0, unroll=8)

    def drain(t, c):                         # every slot must be waited on
        wait(t)
        return c
    lax.fori_loop(chunk - k, chunk, drain, 0, unroll=True)


# ----------------------------------------------------------------------------
# Wrapper.
# ----------------------------------------------------------------------------
def token_embedding(
    token_ids: jax.Array,
    emb_table: jax.Array,
    *,
    chunk_tokens: int | None = None,
    dma_inflight: int = 16,
    v_tile: int = 512,
    max_resident_table_bytes: int | None = None,
    force_hbm_gather: bool = False,
) -> jax.Array:
    """token_ids: [B, S] int, emb_table: [V, E] -> [B, S, E] (table dtype)."""
    B, S = token_ids.shape
    V, E = emb_table.shape
    N = B * S
    itemsize = jnp.dtype(emb_table.dtype).itemsize
    table_bytes = V * E * itemsize

    # Generation-aware VMEM budget (v5e/v6e: 128 MiB, v7x: 64 MiB per TC).
    try:
        vmem_cap = int(pltpu.get_tpu_info().vmem_capacity_bytes)
    except Exception:  # pragma: no cover - conservative fallback
        vmem_cap = 64 * 1024 * 1024
    if max_resident_table_bytes is None:
        resident_budget = min(int(0.6 * vmem_cap), 96 * 1024 * 1024)
        # table is double-buffered by the pipeline even with a constant
        # index_map, so it counts twice; leave headroom for I/O + scratch.
        max_resident_table_bytes = max(0, (resident_budget - (6 << 20)) // 2)

    use_mxu = (table_bytes <= max_resident_table_bytes) and not force_hbm_gather

    # ---- chunk (tokens per grid step) selection -----------------------------
    if chunk_tokens is None:
        chunk_tokens = 256 if use_mxu else 512
    T = max(8, _round_up(chunk_tokens, 8))
    if N >= 256:
        # keep at least 2 chunks when there is enough work (v7x has 2 TCs).
        T = min(T, _round_up((N + 1) // 2, 128))
    if T >= _round_up(N, 8):
        T = _round_up(N, 8)          # single chunk: block == full padded extent
    else:
        T = _round_up(T, 128)        # multi-chunk: (8,128)-friendly blocks
    N_pad = _round_up(N, T)
    n_chunks = N_pad // T

    # ---- ids: clamp + pad ----------------------------------------------------
    flat_ids = jnp.clip(token_ids.reshape(N).astype(jnp.int32), 0, V - 1)
    if N_pad != N:
        flat_ids = jnp.concatenate(
            [flat_ids, jnp.zeros((N_pad - N,), jnp.int32)]
        )

    out_spec = pl.BlockSpec((T, E), lambda i: (i, 0))

    if use_mxu:
        ids_in = flat_ids.reshape(N_pad, 1)
        kernel = functools.partial(_gather_mxu_kernel, vocab=V, v_tile=v_tile)
        in_specs = [
            pl.BlockSpec((T, 1), lambda i: (i, 0)),          # ids chunk (VMEM)
            pl.BlockSpec((V, E), lambda i: (0, 0)),          # resident table
        ]
        scratch_shapes = []
        inter = T * v_tile * 4 + v_tile * E * itemsize + T * E * 4
        vmem_need = 2 * table_bytes + 2 * T * E * itemsize + 2 * T * 8 + inter
    else:
        ids_in = flat_ids
        dma_inflight = int(pl.next_power_of_2(max(2, dma_inflight)))
        kernel = functools.partial(
            _gather_hbm_kernel, chunk=T, inflight=dma_inflight
        )
        in_specs = [
            pl.BlockSpec((T,), lambda i: (i,),
                         memory_space=pltpu.MemorySpace.SMEM),   # ids chunk
            pl.BlockSpec(memory_space=pl.ANY),                   # table in HBM
        ]
        scratch_shapes = [pltpu.SemaphoreType.DMA((dma_inflight,))]
        vmem_need = 2 * T * E * itemsize

    vmem_limit = int(
        min(max(vmem_need + (8 << 20), 16 << 20), int(0.9 * vmem_cap))
    )

    grid_spec = pltpu.PrefetchScalarGridSpec(
        num_scalar_prefetch=0,
        grid=(n_chunks,),
        in_specs=in_specs,
        out_specs=out_spec,
        scratch_shapes=scratch_shapes,
    )

    flat_out = pl.pallas_call(
        kernel,
        out_shape=jax.ShapeDtypeStruct((N_pad, E), emb_table.dtype),
        grid_spec=grid_spec,
        compiler_params=pltpu.CompilerParams(
            dimension_semantics=("parallel",),   # chunks are independent
            vmem_limit_bytes=vmem_limit,
        ),
    )(ids_in, emb_table)

    return flat_out[:N].reshape(B, S, E)


if __name__ == "__main__":
    key = jax.random.PRNGKey(0)
    k1, k2, k3, k4 = jax.random.split(key, 4)

    # ---- Config A: small vocab / small embed (matches the module's intent) --
    vocab_size, embedding_dim, batch_size, seq_len = 64, 32, 2, 8
    token_ids = jax.random.randint(
        k1, (batch_size, seq_len), 0, vocab_size, dtype=jnp.int32
    )
    emb_table = jax.random.normal(
        k2, (vocab_size, embedding_dim), dtype=jnp.float32
    )
    ref = jnp.take(emb_table, token_ids, axis=0)

    out_mxu = jax.block_until_ready(token_embedding(token_ids, emb_table))
    assert out_mxu.shape == (batch_size, seq_len, embedding_dim)
    assert out_mxu.dtype == jnp.float32
    assert jnp.array_equal(out_mxu, ref)

    out_hbm = jax.block_until_ready(
        token_embedding(token_ids, emb_table, force_hbm_gather=True)
    )
    assert jnp.array_equal(out_hbm, ref)

    # ---- Config B: multi-chunk grid, V-tiled one-hot matmul, bf16 table -----
    V2, E2, B2, S2 = 1536, 128, 2, 160
    ids2 = jax.random.randint(k3, (B2, S2), 0, V2, dtype=jnp.int32)
    table2 = jax.random.normal(k4, (V2, E2), dtype=jnp.float32).astype(
        jnp.bfloat16
    )
    ref2 = jnp.take(table2, ids2, axis=0)

    out2_mxu = jax.block_until_ready(token_embedding(ids2, table2))
    assert out2_mxu.shape == (B2, S2, E2) and out2_mxu.dtype == jnp.bfloat16
    assert jnp.array_equal(out2_mxu, ref2)

    out2_hbm = jax.block_until_ready(
        token_embedding(ids2, table2, force_hbm_gather=True)
    )
    assert jnp.array_equal(out2_hbm, ref2)

    # TODO(synk): no backward/VJP (embedding scatter-add) — forward only, as specified.
    print("KERNEL_OK")
</pallas_src>

<mosaic_0001>
module attributes {stable_mosaic.version = 11 : i64} {
  func.func @_gather_mxu_kernel(%arg0: i32, %arg1: memref<16x1xi32, #tpu.memory_space<vmem>>, %arg2: memref<64x32xf32, #tpu.memory_space<vmem>>, %arg3: memref<16x32xf32, #tpu.memory_space<vmem>>) attributes {dimension_semantics = [#tpu.dimension_semantics<parallel>], iteration_bounds = array<i64: 1>, scalar_prefetch = 0 : i64, scratch_operands = 0 : i64, tpu.core_type = #tpu.core_type<tc>, window_params = [{transform_indices = @transform_0, window_bounds = array<i64: 16, 1>}, {pipeline_mode = #tpu.pipeline_mode<synchronous>, transform_indices = @transform_1, window_bounds = array<i64: 64, 32>}, {transform_indices = @transform_2, window_bounds = array<i64: 16, 32>}]} {
    %c0 = arith.constant 0 : index
    %c0_0 = arith.constant 0 : index
    %0 = vector.load %arg1[%c0, %c0_0] : memref<16x1xi32, #tpu.memory_space<vmem>>, vector<16x1xi32>
    %cst = arith.constant 0.000000e+00 : f32
    %1 = vector.broadcast %cst : f32 to vector<16x32xf32>
    %2 = tpu.iota {dimensions = array<i32: 1>} : vector<16x64xi32>
    %c0_i32 = arith.constant 0 : i32
    %3 = vector.broadcast %c0_i32 : i32 to vector<16x64xi32>
    %4 = arith.addi %3, %2 : vector<16x64xi32>
    %5 = vector.broadcast %0 : vector<16x1xi32> to vector<16x64xi32>
    %6 = arith.cmpi eq, %5, %4 : vector<16x64xi32>
    %7 = arith.extui %6 : vector<16x64xi1> to vector<16x64xi32>
    %8 = arith.sitofp %7 : vector<16x64xi32> to vector<16x64xf32>
    %c0_1 = arith.constant 0 : index
    %c0_2 = arith.constant 0 : index
    %9 = vector.load %arg2[%c0_1, %c0_2] : memref<64x32xf32, #tpu.memory_space<vmem>>, vector<64x32xf32>
    %cst_3 = arith.constant dense<0.000000e+00> : vector<16x32xf32>
    %10 = tpu.matmul %8, %9, %cst_3 {dimension_numbers = #tpu.dot_dimension_numbers<[1], [0], [0], [1], [0, 0, 1, 1], [], []>} : vector<16x64xf32>, vector<64x32xf32>, vector<16x32xf32> -> vector<16x32xf32>
    %11 = arith.addf %1, %10 : vector<16x32xf32>
    %c0_4 = arith.constant 0 : index
    %c0_5 = arith.constant 0 : index
    %12 = vector.load %arg3[%c0_4, %c0_5] : memref<16x32xf32, #tpu.memory_space<vmem>>, vector<16x32xf32>
    tpu.vector_store %arg3[%c0_4, %c0_5], %11 {strides = array<i32>} : memref<16x32xf32, #tpu.memory_space<vmem>>, vector<16x32xf32>,
    return
  }
  func.func @transform_0(%arg0: i32) -> (i32, i32) {
    %c0_i32 = arith.constant 0 : i32
    %c0_i32_0 = arith.constant 0 : i32
    return %arg0, %c0_i32 : i32, i32
  }
  func.func @transform_1(%arg0: i32) -> (i32, i32) {
    %c0_i32 = arith.constant 0 : i32
    %c0_i32_0 = arith.constant 0 : i32
    %c0_i32_1 = arith.constant 0 : i32
    return %c0_i32, %c0_i32_0 : i32, i32
  }
  func.func @transform_2(%arg0: i32) -> (i32, i32) {
    %c0_i32 = arith.constant 0 : i32
    %c0_i32_0 = arith.constant 0 : i32
    return %arg0, %c0_i32 : i32, i32
  }
}

</mosaic_0001>

<bundles_post_ra>
// kernel: tpu_custom_call.1
= control target key start
LH: loop header
LB: loop body
LE: loop exit
PB: predicated region body
PF: predicated region fallthrough
CT: control target
= control target key end

     0   :  { %v216_v2 = vmov 0   ;;  %s278_s0 = inlined_call_operand.vmem [shape: s32[16,1], index: 0, kind: input, shape index: {}]   ;;  %s279_s1 = inlined_call_operand.vmem [shape: f32[64,32], index: 1, kind: input, shape index: {}]   ;;  %s280_s2 = inlined_call_operand.hbm [shape: f32[16,32], index: 2, kind: output, shape index: {}]  }
   0x1   :  { %v12_v0 = vld [vmem:[%s278_s0] sm:$0xff]  ;;  %191 = vset.pattern.permute.xlu0 %v216_v2  ;;  %v29_v3 = vld [vmem:[%s279_s1 + $0x8] sm:$0xff]  ;;  %v30_v4 = vld [vmem:[%s279_s1 + $0x10] sm:$0xff] }
   0x2   :  { %v28_v1 = vld [vmem:[%s279_s1] sm:$0xff]  ;;  %v31_v5 = vld [vmem:[%s279_s1 + $0x18] sm:$0xff]  ;;  %17 = vperm.xlu0 %191, %v12_v0   ;;  %v13_v6 = vld [vmem:[%s278_s0 + $0x8] sm:$0xff] }
   0x3   :  { %v170_v7 = vpack.c.bf16 %v29_v3, %v28_v1  ;;  %v174_v8 = vpack.c.bf16 %v31_v5, %v30_v4  ;;  %v32_v9 = vld [vmem:[%s279_s1 + $0x20] sm:$0xff]  ;;  %v33_v10 = vld [vmem:[%s279_s1 + $0x28] sm:$0xff] }
   0x4   :  { %7 = vsyncpa [#allocation3], 0  ;;  %v178_v11 = vpack.c.bf16 %v33_v10, %v32_v9  ;;  %v34_v12 = vld [vmem:[%s279_s1 + $0x30] sm:$0xff]  ;;  %v35_v13 = vld [vmem:[%s279_s1 + $0x38] sm:$0xff]  ;;  %v14_v15 = vlaneseq  ;;  %vm36_vm0 = vcmask 523264   ;;  %v217_v18 = vmov 0.0  }
   0x5   :  { %171 = vmatprep.subr.bf16.mxu0 %v170_v7  ;;  %v182_v14 = vpack.c.bf16 %v35_v13, %v34_v12  ;;  %s218_s28 = smov [#allocation2]   ;;  %vm118_vm3 = vcmask 261120  }
   0x6   :  { %173 = vmatpush3.bf16.msra.mxu0 %v170_v7  ;;  %20 = vperm.xlu0 %191, %v13_v6   ;;  %v15_v16 = vand.u32 127, %v14_v15  ;;  %s126_s1 = sshll.u32 %s218_s28, 4  ;;  %s127_s1 = int_to_ptr.vmem [resolvable:$true] %s126_s1 }
   0x7   :  { %175 = vmatprep.subr.bf16.mxu0 %v174_v8  ;;  %s192_s29 = scalar_lea.vmem %s127_s1, 256  ;;  %p197_p1 = scmp.lt.s32.totalorder %s127_s1, %s127_s1 }
   0x8   :  { %p193_p0 = scmp.ne.s32.totalorder %s127_s1, %s192_s29  ;;  %p198_p2 = scmp.lt.s32.totalorder %s192_s29, %s192_s29 }
   0xa   :  { %177 = vmatpush3.bf16.msra.mxu0 %v174_v8  ;;  %p199_p3 = por %p198_p2, %p197_p1 }
   0xb   :  { %179 = vmatprep.subr.bf16.mxu0 %v178_v11 }
   0xc   :  { %p200_p4 = pnand %p199_p3, %p193_p0 }
   0xe   :  { %181 = vmatpush3.bf16.msra.mxu0 %v178_v11 }
   0xf   :  { %183 = vmatprep.subr.bf16.mxu0 %v182_v14 }
  0x12   :  { %185 = vmatpush3.bf16.msra.mxu0 %v182_v14 }
  0x81   :  { %v18_v17 = vpop.permute.xlu0 %17 }
  0x82   :  { %vm22_vm1 = vcmp.eq.s32.totalorder %v18_v17, %v15_v16 }
  0x83   :  { %v137_v19 = vsel %vm22_vm1, 1.0, %v217_v18 }
  0x84   :  { %167 = vmatprep.mubr.msk.f32.mxu0 %vm36_vm0, %v137_v19 }
  0x85   :  { %v21_v20 = vpop.permute.xlu0 %20 }
  0x86   :  { %vm23_vm2 = vcmp.eq.s32.totalorder %v21_v20, %v15_v16 }
  0x87   :  { %v138_v21 = vsel %vm23_vm2, 1.0, %v217_v18 }
  0x88   :  { %168 = vmatmul.mubr.msk.f32.vlgmr.msra.gmra.mrb[0].mxu0 %vm36_vm0, %v138_v21 }
 0x15b   :  { %v169_v22 = vpop.f32.mrb[0].mxu0 }
 0x15c   :  { %120 = vst.msk [vmem:[#allocation2 + $0x8] sm:$0xff] %vm118_vm3, %v169_v22  ;;  %v109_v23 = vpop.f32.mrb[1].mxu0 }
 0x15d   :  { %119 = vst.msk [vmem:[#allocation2] sm:$0xff] %vm118_vm3, %v109_v23 }
 0x15e   :  { %203 = shalt.err (!%p200_p4)
}
 0x15f   :  { %s204_s4 = scalar_lea.hbm %s280_s2, 256 }
 0x160   :  { %p205_p5 = scmp.ne.s32.totalorder %s280_s2, %s204_s4  ;;  %p208_p6 = scmp.lt.u32.totalorder %s204_s4, %s280_s2 }
 0x162   :  { %p210_p7 = pnand %p208_p6, %p205_p5 }
 0x164   :  { %213 = shalt.err (!%p210_p7)
}
 0x165   :  { %s219_s9 = smov 128   ;;  %s220_s10 = smov 8  }
 0x166   :  { %132 = dma.vmem_to_hbm [thread:$0]  %s127_s1, 256, %s280_s2, [#allocation3], %s219_s9, %s219_s9, %s220_s10  }
 0x167   :  { %214 = dma.done.wait [#allocation3], 256  }
 0x168   :  { %215 = vsyncadd [#allocation3], 4294967040 }
 0x169   :  { %136 = vsyncpa [#allocation3], 1 }

</bundles_post_ra>
